<compile_context>
chip_gen: v6e
topology: v6e:2x2x1
jax: 0.10.0
libtpu: 0.0.40
codegen_flags: <defaults>
</compile_context>

<pallas_src>
import functools

import jax
import jax.numpy as jnp
from jax import lax
from jax.experimental import pallas as pl
from jax.experimental.pallas import tpu as pltpu

BN_EPS = 1e-5
_LANE = 128
_VMEM_FALLBACK = 48 * 1024 * 1024


def _round_up(x, m):
    return ((x + m - 1) // m) * m


def _vmem_limit_bytes():
    """Generation-aware scoped-VMEM budget (~75% of per-core VMEM)."""
    cap = 64 * 1024 * 1024
    try:
        info = pltpu.get_tpu_info()
        cap = int(getattr(info, "vmem_capacity_bytes", cap))
    except Exception:
        cap = 64 * 1024 * 1024
    return int(max(16 * 1024 * 1024, min((cap * 3) // 4, 112 * 1024 * 1024)))


def _pick_query_tile(n2p, c0, layer_bytes, vmem_limit, row_tile):
    """Size the fused-kernel query tile from N2p and the VMEM budget."""
    row_tile = max(8, (int(row_tile) // 8) * 8)
    # Residents (xyz2^T, |xyz2|^2, batch ids, bf16 feat2, layer params) are
    # double-buffered by the BlockSpec pipeline.
    resident = 2 * (5 * n2p * 4 + n2p * c0 * 2 + layer_bytes)
    # ~6 simultaneously-live f32 (T, N2p) temporaries inside the kernel.
    k_live = 6
    budget = vmem_limit - resident - (4 << 20)
    t = budget // (k_live * n2p * 4)
    t = max(8, min(row_tile, (t // 8) * 8))
    return int(t)


# ---------------------------------------------------------------------------
# Kernel 1: Linear with BN pre-folded into (W, b):  y = x @ W + b  [+ ReLU]
# ---------------------------------------------------------------------------
def _linear_kernel(x_ref, w_ref, b_ref, o_ref, *, apply_relu):
    y = jnp.dot(x_ref[...], w_ref[...], preferred_element_type=jnp.float32)
    y = y + b_ref[...]
    if apply_relu:
        y = jnp.maximum(y, 0.0)
    o_ref[...] = y.astype(o_ref.dtype)


def linear_folded(x, W, b, *, relu=False, row_tile=512,
                  out_dtype=jnp.float32, vmem_limit=_VMEM_FALLBACK):
    """Row-tiled, pipelined y = x @ W + b. Pads rows if needed (returns padded)."""
    M, Cin = x.shape
    Cout = W.shape[1]
    tile = min(max(8, (int(row_tile) // 8) * 8), _round_up(M, 8))
    Mp = _round_up(M, tile)
    if Mp != M:
        x = jnp.pad(x, ((0, Mp - M), (0, 0)))
    return pl.pallas_call(
        functools.partial(_linear_kernel, apply_relu=relu),
        out_shape=jax.ShapeDtypeStruct((Mp, Cout), out_dtype),
        grid=(Mp // tile,),
        in_specs=[
            pl.BlockSpec((tile, Cin), lambda i: (i, 0)),
            pl.BlockSpec((Cin, Cout), lambda i: (0, 0)),
            pl.BlockSpec((1, Cout), lambda i: (0, 0)),
        ],
        out_specs=pl.BlockSpec((tile, Cout), lambda i: (i, 0)),
        compiler_params=pltpu.CompilerParams(
            dimension_semantics=("parallel",),
            vmem_limit_bytes=vmem_limit),
    )(x, W, b.reshape(1, Cout))


# ---------------------------------------------------------------------------
# Kernel 2: fused 3-NN inverse-(squared)-distance interpolation + ReLU + the
# whole mlp_convs stack (BN folded).  Source data / layer weights VMEM-
# resident; only query-row tiles stream through the pipeline.
# ---------------------------------------------------------------------------
def _make_interp_mlp_kernel(n_layers):
    def kernel(*refs):
        (xyz1_ref, sq1_ref, b1_ref, x2t_ref, sq2_ref, b2_ref,
         feat2_ref) = refs[:7]
        layer_refs = refs[7:7 + 2 * n_layers]
        o_ref = refs[7 + 2 * n_layers]

        # Pairwise squared distances on the MXU:
        #   d2 = |x1|^2 + |x2|^2 - 2 x1 . x2^T, clamped at 0.
        cross = jnp.dot(xyz1_ref[...], x2t_ref[...],
                        preferred_element_type=jnp.float32)          # (T, N2)
        d = jnp.maximum(sq1_ref[...] + sq2_ref[...] - 2.0 * cross, 0.0)

        # Restrict neighbours to the same batch; padded rows/columns carry a
        # sentinel batch id (-1 / -2) and are never selected.
        big = jnp.float32(1e30)
        d = jnp.where(b1_ref[...] == b2_ref[...], d, big)            # (T, N2)

        n2 = d.shape[1]
        col = lax.broadcasted_iota(jnp.int32, d.shape, 1)

        # 3-NN inverse-(squared)-distance weights, accumulated in place so only
        # one un-normalized (T, N2) weight map (+ d, col) stays live.
        w = jnp.zeros_like(d)
        total = jnp.zeros(d.shape[:1] + (1,), jnp.float32)
        for _ in range(3):
            mval = jnp.min(d, axis=1, keepdims=True)                 # (T, 1)
            amin = jnp.min(jnp.where(d == mval, col, n2),
                           axis=1, keepdims=True)
            sel = col == amin                                        # (T, N2)
            # pointops.knnquery returns squared distances -> 1/(d2 + 1e-8).
            recip = pl.reciprocal(mval + 1e-8, approx=True)          # EUP slot
            w = w + jnp.where(sel, recip, 0.0)
            total = total + recip
            d = jnp.where(sel, big, d)

        w = w * pl.reciprocal(total, approx=True)

        # Interpolate against the VMEM-resident bf16 feature table (MXU).
        # TODO(synk): true 3-row gather for very large N2 (3*T*C0 work).
        y = jnp.dot(w.astype(jnp.bfloat16), feat2_ref[...],
                    preferred_element_type=jnp.float32)
        # skip_channel is None -> new_points = relu(interpolated_points)
        y = jnp.maximum(y, 0.0)

        # Fused mlp_convs stack (BN folded); weights resident, activations in
        # vregs, accumulation in f32, MXU operands in bf16.
        for li in range(n_layers):
            Wl = layer_refs[2 * li][...]
            bl = layer_refs[2 * li + 1][...]
            y = jnp.dot(y.astype(jnp.bfloat16), Wl,
                        preferred_element_type=jnp.float32) + bl
            y = jnp.maximum(y, 0.0)

        o_ref[...] = y.astype(o_ref.dtype)

    return kernel


def interp_mlp_fused(xyz1p, sq1p, b1p, xyz2p, b2p, feat2, layers, *,
                     query_tile, vmem_limit):
    N1p = xyz1p.shape[0]
    N2p, C0 = feat2.shape
    assert N1p % query_tile == 0  # guaranteed by the wrapper's padding

    n_layers = len(layers)
    c_out = layers[-1][0].shape[1] if n_layers else C0

    x2t = xyz2p.T                                        # (3, N2p), pts on lanes
    sq2 = jnp.sum(xyz2p * xyz2p, axis=1).reshape(1, N2p)

    in_specs = [
        pl.BlockSpec((query_tile, 3), lambda i: (i, 0)),   # xyz1 tile
        pl.BlockSpec((query_tile, 1), lambda i: (i, 0)),   # |xyz1|^2 tile
        pl.BlockSpec((query_tile, 1), lambda i: (i, 0)),   # query batch ids
        pl.BlockSpec((3, N2p), lambda i: (0, 0)),          # xyz2^T (resident)
        pl.BlockSpec((1, N2p), lambda i: (0, 0)),          # |xyz2|^2 (resident)
        pl.BlockSpec((1, N2p), lambda i: (0, 0)),          # source batch ids
        pl.BlockSpec((N2p, C0), lambda i: (0, 0)),         # feat2 bf16 (resident)
    ]
    args = [xyz1p, sq1p, b1p.reshape(N1p, 1), x2t, sq2,
            b2p.reshape(1, N2p), feat2]
    for (W, b) in layers:
        cin, cout = W.shape
        in_specs.append(pl.BlockSpec((cin, cout), lambda i: (0, 0)))
        in_specs.append(pl.BlockSpec((1, cout), lambda i: (0, 0)))
        args += [W, b.reshape(1, cout)]

    return pl.pallas_call(
        _make_interp_mlp_kernel(n_layers),
        out_shape=jax.ShapeDtypeStruct((N1p, c_out), jnp.float32),
        grid=(N1p // query_tile,),
        in_specs=in_specs,
        out_specs=pl.BlockSpec((query_tile, c_out), lambda i: (i, 0)),
        compiler_params=pltpu.CompilerParams(
            dimension_semantics=("parallel",),
            vmem_limit_bytes=vmem_limit),
    )(*args)


# ---------------------------------------------------------------------------
# Parameters (deterministic synthetic init; Linear stored as (in, out)) and
# eval-mode BatchNorm folding.
# ---------------------------------------------------------------------------
def _dense_init(key, cin, cout):
    kw, kb = jax.random.split(key)
    W = jax.random.normal(kw, (cin, cout), jnp.float32) / jnp.sqrt(float(cin))
    b = 0.01 * jax.random.normal(kb, (cout,), jnp.float32)
    return W, b


def _bn_init(key, c):
    kg, kb, km, kv = jax.random.split(key, 4)
    gamma = 1.0 + 0.1 * jax.random.normal(kg, (c,), jnp.float32)
    beta = 0.1 * jax.random.normal(kb, (c,), jnp.float32)
    mean = 0.1 * jax.random.normal(km, (c,), jnp.float32)
    var = jax.random.uniform(kv, (c,), jnp.float32, minval=0.5, maxval=1.5)
    return gamma, beta, mean, var


def init_params(key, prev_channel, mlp):
    n_layers = len(mlp) - 1
    keys = jax.random.split(key, 2 + 2 * max(n_layers, 1))
    params = {}
    W, b = _dense_init(keys[0], prev_channel, mlp[0])
    g, be, mu, var = _bn_init(keys[1], mlp[0])
    params["f0"] = dict(W=W, b=b, gamma=g, beta=be, mean=mu, var=var)
    params["mlp"] = []
    last = mlp[0]
    for li, cout in enumerate(mlp[1:]):
        W, b = _dense_init(keys[2 + 2 * li], last, cout)
        g, be, mu, var = _bn_init(keys[3 + 2 * li], cout)
        params["mlp"].append(dict(W=W, b=b, gamma=g, beta=be, mean=mu, var=var))
        last = cout
    return params


def _fold(W, b, gamma, beta, mean, var):
    scale = gamma / jnp.sqrt(var + BN_EPS)
    return W * scale[None, :], (b - mean) * scale + beta


def fold_params(params):
    f0 = params["f0"]
    return {
        "f0": _fold(f0["W"], f0["b"], f0["gamma"], f0["beta"], f0["mean"], f0["var"]),
        "mlp": [_fold(l["W"], l["b"], l["gamma"], l["beta"], l["mean"], l["var"])
                for l in params["mlp"]],
    }


def _pad_out_channels(W, b, mult=_LANE):
    cout = W.shape[1]
    cpad = _round_up(cout, mult)
    if cpad != cout:
        W = jnp.pad(W, ((0, 0), (0, cpad - cout)))
        b = jnp.pad(b, ((0, cpad - cout),))
    return W, b, cout


def _offset_to_batch(offset, n):
    return jnp.searchsorted(offset, jnp.arange(n), side="right").astype(jnp.int32)


# ---------------------------------------------------------------------------
# Forward (points1 is None / skip_channel is None branch)
# ---------------------------------------------------------------------------
def surface_fp_cd_forward(params, pos_feat_off1, pos_feat_off2, *, row_tile=512):
    xyz1, points1, offset1 = pos_feat_off1
    xyz2, points2, offset2 = pos_feat_off2
    assert points1 is None  # implemented configuration (skip_channel=None)

    vmem_limit = _vmem_limit_bytes()
    row_tile = max(8, (int(row_tile) // 8) * 8)

    N1 = xyz1.shape[0]
    N2 = xyz2.shape[0]
    b1 = _offset_to_batch(offset1, N1)
    b2 = _offset_to_batch(offset2, N2)

    folded = fold_params(params)
    W0, b0 = folded["f0"]
    mlp_layers = list(folded["mlp"])

    # Lane-dense final store: pad the last produced channel dim to 128.
    if mlp_layers:
        Wl, bl = mlp_layers[-1]
        Wl, bl, c_true = _pad_out_channels(Wl, bl)
        mlp_layers[-1] = (Wl, bl)
    else:
        W0, b0, c_true = _pad_out_channels(W0, b0)

    # bf16 MXU operands for the fused mlp (biases stay f32, accum stays f32).
    mlp_layers = [(W.astype(jnp.bfloat16), b) for (W, b) in mlp_layers]

    # --- source side (N2): lane-aligned pad + sentinel batch id -2 ---
    N2a = _round_up(N2, _LANE)
    tile2 = min(row_tile, N2a)
    N2p = _round_up(N2a, tile2)
    points2p = jnp.pad(points2, ((0, N2p - N2), (0, 0)))
    xyz2p = jnp.pad(xyz2, ((0, N2p - N2), (0, 0)))
    b2p = jnp.full((N2p,), -2, jnp.int32).at[:N2].set(b2)

    # feat2 = BN(f0-linear(points2)) emitted directly in bf16 (VMEM resident
    # table for the fused kernel; half the HBM writeback/readback).
    feat2 = linear_folded(points2p, W0, b0, relu=False, row_tile=tile2,
                          out_dtype=jnp.bfloat16, vmem_limit=vmem_limit)

    # --- query side (N1): budget-sized tile + sentinel batch id -1 ---
    layer_bytes = sum(W.size * 2 + b.size * 4 for (W, b) in mlp_layers)
    tile1 = _pick_query_tile(N2p, feat2.shape[1], layer_bytes, vmem_limit,
                             row_tile)
    N1p = _round_up(N1, tile1)
    xyz1p = jnp.pad(xyz1, ((0, N1p - N1), (0, 0)))
    sq1p = jnp.sum(xyz1p * xyz1p, axis=1, keepdims=True)   # precomputed |x1|^2
    b1p = jnp.full((N1p,), -1, jnp.int32).at[:N1].set(b1)

    out = interp_mlp_fused(xyz1p, sq1p, b1p, xyz2p, b2p, feat2, mlp_layers,
                           query_tile=tile1, vmem_limit=vmem_limit)
    return out[:N1, :c_true]


# ---------------------------------------------------------------------------
# Pure-JAX reference (un-fused, un-folded, f32) for verification
# ---------------------------------------------------------------------------
def reference(params, xyz1, offset1, xyz2, points2, offset2):
    def bn(x, p):
        return (x - p["mean"]) * lax.rsqrt(p["var"] + BN_EPS) * p["gamma"] + p["beta"]

    b1 = _offset_to_batch(offset1, xyz1.shape[0])
    b2 = _offset_to_batch(offset2, xyz2.shape[0])

    f0 = params["f0"]
    feat2 = bn(points2 @ f0["W"] + f0["b"], f0)

    d2 = ((xyz1[:, None, :] - xyz2[None, :, :]) ** 2).sum(-1)
    d2 = jnp.where(b1[:, None] == b2[None, :], d2, 1e30)
    neg_d, idx = lax.top_k(-d2, 3)
    dist = -neg_d
    recip = 1.0 / (dist + 1e-8)
    w = recip / recip.sum(-1, keepdims=True)
    interp = (feat2[idx] * w[..., None]).sum(1)

    y = jnp.maximum(interp, 0.0)
    for layer in params["mlp"]:
        y = jnp.maximum(bn(y @ layer["W"] + layer["b"], layer), 0.0)
    return y


if __name__ == "__main__":
    key = jax.random.PRNGKey(0)
    # Small but non-aligned shapes to exercise padding/masking + multi-step grid.
    N1, N2, C_prev = 200, 75, 16
    mlp = [32, 64]

    k1, k2, k3, kp = jax.random.split(key, 4)
    xyz1 = jax.random.normal(k1, (N1, 3), jnp.float32)
    xyz2 = jax.random.normal(k2, (N2, 3), jnp.float32)
    points2 = 0.5 * jax.random.normal(k3, (N2, C_prev), jnp.float32)
    offset1 = jnp.array([112, 200], jnp.int32)   # two "batches"
    offset2 = jnp.array([40, 75], jnp.int32)

    params = init_params(kp, C_prev, mlp)

    # row_tile=64 only to exercise a multi-step grid at toy sizes; the
    # production default row_tile=512 gives fully 128-aligned tiles.
    out = surface_fp_cd_forward(params,
                                (xyz1, None, offset1),
                                (xyz2, points2, offset2),
                                row_tile=64)
    out = jax.block_until_ready(out)

    ref = reference(params, xyz1, offset1, xyz2, points2, offset2)
    assert out.shape == (N1, mlp[-1]), out.shape
    # Tolerance accounts for bf16 residents / MXU operands and the EUP
    # approximate reciprocals (real bugs produce errors >> 0.1).
    assert jnp.allclose(out, ref, atol=4e-2, rtol=4e-2), float(
        jnp.max(jnp.abs(out - ref)))
    print("KERNEL_OK")
</pallas_src>

<mosaic_0001>
module attributes {stable_mosaic.version = 11 : i64} {
  func.func @_linear_kernel(%arg0: i32, %arg1: memref<64x16xf32, #tpu.memory_space<vmem>>, %arg2: memref<16x32xf32, #tpu.memory_space<vmem>>, %arg3: memref<1x32xf32, #tpu.memory_space<vmem>>, %arg4: memref<64x32xbf16, #tpu.memory_space<vmem>>) attributes {dimension_semantics = [#tpu.dimension_semantics<parallel>], iteration_bounds = array<i64: 2>, scalar_prefetch = 0 : i64, scratch_operands = 0 : i64, tpu.core_type = #tpu.core_type<tc>, window_params = [{transform_indices = @transform_0, window_bounds = array<i64: 64, 16>}, {pipeline_mode = #tpu.pipeline_mode<synchronous>, transform_indices = @transform_1, window_bounds = array<i64: 16, 32>}, {pipeline_mode = #tpu.pipeline_mode<synchronous>, transform_indices = @transform_2, window_bounds = array<i64: 1, 32>}, {transform_indices = @transform_3, window_bounds = array<i64: 64, 32>}]} {
    %c0 = arith.constant 0 : index
    %c0_0 = arith.constant 0 : index
    %0 = vector.load %arg1[%c0, %c0_0] : memref<64x16xf32, #tpu.memory_space<vmem>>, vector<64x16xf32>
    %c0_1 = arith.constant 0 : index
    %c0_2 = arith.constant 0 : index
    %1 = vector.load %arg2[%c0_1, %c0_2] : memref<16x32xf32, #tpu.memory_space<vmem>>, vector<16x32xf32>
    %cst = arith.constant dense<0.000000e+00> : vector<64x32xf32>
    %2 = tpu.matmul %0, %1, %cst {dimension_numbers = #tpu.dot_dimension_numbers<[1], [0], [0], [1], [0, 0, 1, 1], [], []>} : vector<64x16xf32>, vector<16x32xf32>, vector<64x32xf32> -> vector<64x32xf32>
    %c0_3 = arith.constant 0 : index
    %c0_4 = arith.constant 0 : index
    %3 = vector.load %arg3[%c0_3, %c0_4] : memref<1x32xf32, #tpu.memory_space<vmem>>, vector<1x32xf32>
    %4 = vector.broadcast %3 : vector<1x32xf32> to vector<64x32xf32>
    %5 = arith.addf %2, %4 : vector<64x32xf32>
    %6 = arith.truncf %5 : vector<64x32xf32> to vector<64x32xbf16>
    %c0_5 = arith.constant 0 : index
    %c0_6 = arith.constant 0 : index
    %7 = vector.load %arg4[%c0_5, %c0_6] : memref<64x32xbf16, #tpu.memory_space<vmem>>, vector<64x32xbf16>
    tpu.vector_store %arg4[%c0_5, %c0_6], %6 {strides = array<i32>} : memref<64x32xbf16, #tpu.memory_space<vmem>>, vector<64x32xbf16>,
    return
  }
  func.func @transform_0(%arg0: i32) -> (i32, i32) {
    %c0_i32 = arith.constant 0 : i32
    %c0_i32_0 = arith.constant 0 : i32
    return %arg0, %c0_i32 : i32, i32
  }
  func.func @transform_1(%arg0: i32) -> (i32, i32) {
    %c0_i32 = arith.constant 0 : i32
    %c0_i32_0 = arith.constant 0 : i32
    %c0_i32_1 = arith.constant 0 : i32
    return %c0_i32, %c0_i32_0 : i32, i32
  }
  func.func @transform_2(%arg0: i32) -> (i32, i32) {
    %c0_i32 = arith.constant 0 : i32
    %c0_i32_0 = arith.constant 0 : i32
    %c0_i32_1 = arith.constant 0 : i32
    return %c0_i32, %c0_i32_0 : i32, i32
  }
  func.func @transform_3(%arg0: i32) -> (i32, i32) {
    %c0_i32 = arith.constant 0 : i32
    %c0_i32_0 = arith.constant 0 : i32
    return %arg0, %c0_i32 : i32, i32
  }
}

</mosaic_0001>

<bundles_post_ra>
// kernel: tpu_custom_call.1
= control target key start
LH: loop header
LB: loop body
LE: loop exit
PB: predicated region body
PF: predicated region fallthrough
CT: control target
= control target key end

     0   :  { %s520_s12 = smov 0   ;;  %s566_s0 = inlined_call_operand.vmem [shape: f32[128,16], index: 0, kind: input, shape index: {}]   ;;  %s567_s1 = inlined_call_operand.vmem [shape: f32[16,32], index: 1, kind: input, shape index: {}]   ;;  %s568_s2 = inlined_call_operand.vmem [shape: f32[1,32], index: 2, kind: input, shape index: {}]   ;;  %s569_s3 = inlined_call_operand.vmem [shape: bf16[128,32], index: 3, kind: output, shape index: {}]  }
   0x1 LB: > { %s418_s13 = sadd.s32 4294967295, %s498_s12   ;;  %p422_p0 = scmp.ge.s32.totalorder %s498_s12, 1  ;;  %s498_s12 = sphi %s520_s12, %s13_s12  }
   0x2   : > { %p138_p1 = scmp.lt.s32.totalorder %s498_s12, 3 }
   0x4   : > { %p139_p2 = pnand %p422_p0, %p138_p1 }
   0x5   : > { %s423_s18 = sshll.u32 (!%p139_p2), %s418_s13, 3 }
   0x6   : > { %142 = sbr.rel (%p139_p2) target bundleno = 221 (0xdd), region = 32  ;;  %p163_p3 = scmp.lt.s32.totalorder (!%p139_p2), %s423_s18, 15 }
   0xb   : > { %v183_v0 = vld [vmem:[%s567_s1 + $0x8] sm:$0xff]  ;;  %v182_v1 = vld [vmem:[%s567_s1] sm:$0xff]  ;;  %s571_s18 = smov (!%p163_p3, %s423_s18), 15  ;;  %vm191_vm0 = vcmask 130048   ;;  %vm353_vm1 = vcmask 257024  }
   0xc   : > { %464 = vmatprep.subr.mxu0 %v183_v0  ;;  %480 = vmatprep.subr.mxu1 %v183_v0  ;;  %s424_s19 = sshll.u32 %s571_s18, 3  ;;  %v427_v10 = vld [vmem:[%s568_s2] ss:$0 sm:$0xff]  ;;  %s426_s25 = sshll.u32 %s571_s18, 2 }
   0xd   : > { %465 = vmatpush3.msra.mxu0 %v183_v0  ;;  %482 = vmatpush3.msra.mxu1 %v183_v0  ;;  %s166_s22 = scalar_lea.vmem %s566_s0, %s424_s19  ;;  %s172_s28 = scalar_lea.vmem %s569_s3, %s426_s25 }
   0xe   : > { %466 = vmatprep.subr.mxu0 %v182_v1  ;;  %481 = vmatprep.subr.mxu1 %v182_v1  ;;  %v174_v2 = vld [vmem:[%s166_s22] sm:$0xff]  ;;  %v175_v4 = vld [vmem:[%s166_s22 + $0x8] sm:$0xff]  ;;  %v176_v6 = vld [vmem:[%s166_s22 + $0x10] sm:$0xff] }
   0xf   : > { %467 = vmatpush3.msra.mxu0 %v182_v1  ;;  %483 = vmatpush3.msra.mxu1 %v182_v1  ;;  %v178_v3 = vld [vmem:[%s166_s22 + $0x20] sm:$0xff]  ;;  %v179_v5 = vld [vmem:[%s166_s22 + $0x28] sm:$0xff]  ;;  %v180_v7 = vld [vmem:[%s166_s22 + $0x30] sm:$0xff] }
  0x10   : > { %468 = vmatprep.mubr.msk.f32.mxu0 %vm191_vm0, %v174_v2  ;;  %474 = vmatprep.mubr.msk.f32.mxu1 %vm191_vm0, %v178_v3  ;;  %v177_v8 = vld [vmem:[%s166_s22 + $0x18] sm:$0xff] }
  0x11   : > { %469 = vmatmul.mubr.msk.f32.vlgmr.msra.gmra.mxu0 %vm191_vm0, %v175_v4  ;;  %475 = vmatmul.mubr.msk.f32.vlgmr.msra.gmra.mxu1 %vm191_vm0, %v179_v5  ;;  %v181_v9 = vld [vmem:[%s166_s22 + $0x38] sm:$0xff] }
  0x12   : > { %471 = vmatprep.mubr.msk.f32.mxu0 %vm191_vm0, %v176_v6  ;;  %477 = vmatprep.mubr.msk.f32.mxu1 %vm191_vm0, %v180_v7 }
  0x15   : > { %472 = vmatmul.mubr.msk.f32.gmra.mxu0 %vm191_vm0, %v177_v8  ;;  %478 = vmatmul.mubr.msk.f32.gmra.mxu1 %vm191_vm0, %v181_v9 }
  0xd1   : > { %v470_v11 = vpop.f32.mrf.mxu0  ;;  %v476_v12 = vpop.f32.mrf.mxu1 }
  0xd2   : > { %v288_v13 = vadd.f32 %v470_v11, %v427_v10  ;;  %v308_v14 = vadd.f32 %v476_v12, %v427_v10 }
  0xd3   : > { %v282_v15 = vpop.f32.mrf.mxu0  ;;  %v302_v16 = vpop.f32.mrf.mxu1 }
  0xd4   : > { %v447_v17 = vpack.c.bf16 %v288_v13, %v288_v13  ;;  %v451_v18 = vpack.c.bf16 %v308_v14, %v308_v14  ;;  %v283_v19 = vadd.f32 %v427_v10, %v282_v15  ;;  %v303_v20 = vadd.f32 %v427_v10, %v302_v16 }
  0xd5   : > { %v473_v21 = vpop.f32.mrf.mxu0  ;;  %v479_v22 = vpop.f32.mrf.mxu1 }
  0xd6   : > { %355 = vst.msk [vmem:[%s172_s28 + $0x4] sm:$0xf] %vm353_vm1, %v447_v17  ;;  %359 = vst.msk [vmem:[%s172_s28 + $0x14] sm:$0xf] %vm353_vm1, %v451_v18  ;;  %v446_v23 = vpack.c.bf16 %v283_v19, %v283_v19  ;;  %v450_v24 = vpack.c.bf16 %v303_v20, %v303_v20  ;;  %v298_v25 = vadd.f32 %v473_v21, %v427_v10 }
  0xd7   : > { %v318_v26 = vadd.f32 %v479_v22, %v427_v10  ;;  %v292_v27 = vpop.f32.mrf.mxu0  ;;  %v312_v28 = vpop.f32.mrf.mxu1 }
  0xd8   : > { %354 = vst.msk [vmem:[%s172_s28] sm:$0xf] %vm353_vm1, %v446_v23  ;;  %358 = vst.msk [vmem:[%s172_s28 + $0x10] sm:$0xf] %vm353_vm1, %v450_v24  ;;  %v449_v29 = vpack.c.bf16 %v298_v25, %v298_v25  ;;  %v293_v31 = vadd.f32 %v427_v10, %v292_v27  ;;  %v313_v32 = vadd.f32 %v427_v10, %v312_v28 }
  0xd9   : > { %v453_v30 = vpack.c.bf16 %v318_v26, %v318_v26 }
  0xda   : > { %357 = vst.msk [vmem:[%s172_s28 + $0xc] sm:$0xf] %vm353_vm1, %v449_v29  ;;  %v448_v33 = vpack.c.bf16 %v293_v31, %v293_v31  ;;  %v452_v34 = vpack.c.bf16 %v313_v32, %v313_v32 }
  0xdb   : > { %361 = vst.msk [vmem:[%s172_s28 + $0x1c] sm:$0xf] %vm353_vm1, %v453_v30 }
  0xdc   : > { %356 = vst.msk [vmem:[%s172_s28 + $0x8] sm:$0xf] %vm353_vm1, %v448_v33  ;;  %360 = vst.msk [vmem:[%s172_s28 + $0x18] sm:$0xf] %vm353_vm1, %v452_v34 }
  0xdd PF: > { %s13_s12 = sadd.s32 1, %s498_s12  }
  0xde   : > { %p10_p4 = scmp.ge.s32.totalorder %s13_s12, 4  }
  0xe0   :  { %12 = sbr.rel (!%p10_p4) target bundleno = 1 (0x1), region = 62 }

</bundles_post_ra>
